<compile_context>
chip_gen: v7x
topology: tpu7x:2x2x1
jax: 0.10.0
libtpu: 0.0.40
codegen_flags: <defaults>
</compile_context>

<pallas_src>
import functools
import math

import jax
import jax.numpy as jnp
from jax import lax
from jax.experimental import pallas as pl
from jax.experimental.pallas import tpu as pltpu

_LANES = 128           # lane-dense last dim
_SUBLANES = 8          # f32 vreg sublane count
_MAX_BLOCK_ROWS = 4096  # 4096 x 128 f32 = 2 MiB / input block (8 MiB double-buffered)


def _round_up(x, m):
    return ((x + m - 1) // m) * m


def _num_tensorcores():
    """Best-effort TensorCores-per-chip (v7x = 2). Defaults to 1 on any doubt."""
    try:
        info = pltpu.get_tpu_info()
    except Exception:
        return 1
    for name in ("num_cores", "core_count", "num_tensorcores",
                 "tensorcore_count", "cores_per_chip"):
        v = getattr(info, name, None)
        if v is None:
            continue
        try:
            v = int(v)
        except (TypeError, ValueError):
            continue
        if v >= 1:
            return min(v, 2)
    return 1


def _focal_loss_kernel(preds_ref, targets_ref, loss_acc_ref, tgt_acc_ref, *,
                       gamma, alpha, block_rows, blocks_per_core, n_cores,
                       needs_mask, rows_valid_last, last_cols):
    c = pl.program_id(0)   # core axis (CORE_PARALLEL on multi-TC chips, size 1 else)
    i = pl.program_id(1)   # reduction axis over row blocks

    # Zero the small resident accumulators at the start of each core's sweep.
    @pl.when(i == 0)
    def _():
        loss_acc_ref[...] = jnp.zeros_like(loss_acc_ref)
        tgt_acc_ref[...] = jnp.zeros_like(tgt_acc_ref)

    x = preds_ref[...].astype(jnp.float32)
    t = targets_ref[...].astype(jnp.float32)

    # clamp(sigmoid(x), 1e-3, 1-1e-3) == sigmoid(clamp(x, -log 999, +log 999)).
    # Clipping the logit lets us derive log(1-p), log(p), 1-p, p from a single
    # exp + log (softplus identity) -> fewer EUP transcendentals than
    # sigmoid + log(p) + log(1-p).
    lim = math.log(999.0)            # logit(0.999)
    xc = jnp.clip(x, -lim, lim)
    e = jnp.exp(xc)                  # EUP; bounded in [1/999, 999]
    log_1mp = -jnp.log(1.0 + e)      # log(1-p) = -softplus(x)   (EUP)
    log_p = xc + log_1mp             # log(p)   = x - softplus(x) (VPU)
    one_m_p = jnp.exp(log_1mp)       # 1 - p                      (EUP)
    p = 1.0 - one_m_p                # VPU

    if gamma == 2.0:
        # Pure-VPU squares instead of a float-exponent pow.
        pow_1mp = one_m_p * one_m_p
        pow_p = p * p
    else:
        # General gamma: reuse the logs we already have.
        pow_1mp = jnp.exp(gamma * log_1mp)
        pow_p = jnp.exp(gamma * log_p)

    term1 = pow_1mp * log_p          # (1 - p)^gamma * log(p)
    term2 = pow_p * log_1mp          # p^gamma * log(1 - p)

    bce = jnp.where(t == 1.0, (-alpha) * term1,
                    jnp.where(t == 0.0, -(1.0 - alpha) * term2, 0.0))

    def accumulate(bce_v, t_v):
        # Fold the (block_rows, 128) tile into an (8, 128) partial sum: the same
        # VPU adds we would pay anyway, but the resident refs stay 4 KiB each.
        loss_acc_ref[...] += bce_v.reshape(
            block_rows // _SUBLANES, _SUBLANES, _LANES).sum(axis=0)
        tgt_acc_ref[...] += t_v.reshape(
            block_rows // _SUBLANES, _SUBLANES, _LANES).sum(axis=0)

    if not needs_mask:
        accumulate(bce, t)
    else:
        # Only the globally-last block is ragged; gate the mask work on it so
        # all other grid steps pay zero extra VPU/int work.
        is_tail = jnp.logical_and(c == n_cores - 1, i == blocks_per_core - 1)

        @pl.when(jnp.logical_not(is_tail))
        def _():
            accumulate(bce, t)

        @pl.when(is_tail)
        def _():
            # Thresholds are static Python ints (relative to the block start),
            # so this never overflows int32 regardless of total size.
            r_ids = lax.broadcasted_iota(jnp.int32, bce.shape, 0)
            if last_cols == _LANES:
                valid = r_ids < rows_valid_last
            else:
                c_ids = lax.broadcasted_iota(jnp.int32, bce.shape, 1)
                valid = jnp.logical_or(
                    r_ids < rows_valid_last - 1,
                    jnp.logical_and(r_ids == rows_valid_last - 1,
                                    c_ids < last_cols))
            # Mask BOTH the loss and the target sum (partial-block rows hold
            # unspecified data; select-based where also kills any NaNs there).
            accumulate(jnp.where(valid, bce, 0.0), jnp.where(valid, t, 0.0))


def sigmoid_focal_loss(preds, targets, gamma=2.0, alpha=0.25):
    """Matches SigmoidFocalLoss(gamma, alpha).forward(preds, targets) for (B, C, N)."""
    total = math.prod(preds.shape)

    p_flat = preds.reshape(total)
    t_flat = targets.reshape(total)

    ragged_cols = total % _LANES
    if ragged_cols:
        # Rare fallback: pad up to a lane multiple (full copy only in this case).
        # TODO(synk): handle the sub-128 remainder with a tiny XLA epilogue to
        # avoid this copy for non-lane-aligned inputs.
        pad = _LANES - ragged_cols
        p_flat = jnp.pad(p_flat, (0, pad))
        t_flat = jnp.pad(t_flat, (0, pad))

    rows = pl.cdiv(total, _LANES)
    p2d = p_flat.reshape(rows, _LANES)   # free re-layout when total % 128 == 0
    t2d = t_flat.reshape(rows, _LANES)

    block_rows = min(_MAX_BLOCK_ROWS, _round_up(rows, _SUBLANES))
    n_blocks = pl.cdiv(rows, block_rows)

    cores = _num_tensorcores()
    n_cores = cores if (cores > 1 and n_blocks % cores == 0) else 1
    blocks_per_core = n_blocks // n_cores

    ragged_rows = rows % block_rows
    needs_mask = (ragged_rows != 0) or (ragged_cols != 0)
    rows_valid_last = ragged_rows if ragged_rows else block_rows
    last_cols = ragged_cols if ragged_cols else _LANES

    kernel = functools.partial(
        _focal_loss_kernel, gamma=gamma, alpha=alpha, block_rows=block_rows,
        blocks_per_core=blocks_per_core, n_cores=n_cores,
        needs_mask=needs_mask, rows_valid_last=rows_valid_last,
        last_cols=last_cols)

    in_map = lambda c, i: (c * blocks_per_core + i, 0)
    acc_map = lambda c, i: (c, 0, 0)   # constant over i -> resident accumulator

    if n_cores > 1:
        core_sem = getattr(pltpu, "CORE_PARALLEL", "parallel")  # real dual-TC split
    else:
        core_sem = "arbitrary"

    loss_parts, tgt_parts = pl.pallas_call(
        kernel,
        out_shape=(
            jax.ShapeDtypeStruct((n_cores, _SUBLANES, _LANES), jnp.float32),
            jax.ShapeDtypeStruct((n_cores, _SUBLANES, _LANES), jnp.float32),
        ),
        grid_spec=pltpu.PrefetchScalarGridSpec(
            num_scalar_prefetch=0,
            grid=(n_cores, blocks_per_core),
            in_specs=[
                pl.BlockSpec((block_rows, _LANES), in_map),
                pl.BlockSpec((block_rows, _LANES), in_map),
            ],
            out_specs=[
                pl.BlockSpec((None, _SUBLANES, _LANES), acc_map),
                pl.BlockSpec((None, _SUBLANES, _LANES), acc_map),
            ],
        ),
        compiler_params=pltpu.CompilerParams(
            dimension_semantics=(core_sem, "arbitrary"),
        ),
    )(p2d, t2d)

    # Tiny (<=2 x 8 x 128) cross-lane reduce + divide outside the hot loop.
    loss_sum = jnp.sum(loss_parts)
    tgt_sum = jnp.sum(tgt_parts)
    return loss_sum / jnp.maximum(tgt_sum, 1.0)


def _reference_loss(preds, targets, gamma=2.0, alpha=0.25):
    # Pure-JAX reference mirroring the PyTorch semantics.
    p = jax.nn.sigmoid(preds.astype(jnp.float32))
    p = jnp.clip(p, 0.001, 1.0 - 0.001)
    t = targets.astype(jnp.float32)
    term1 = (1.0 - p) ** gamma * jnp.log(p)
    term2 = p ** gamma * jnp.log(1.0 - p)
    bce = -(t == 1.0).astype(jnp.float32) * alpha * term1 \
          - (t == 0.0).astype(jnp.float32) * (1.0 - alpha) * term2
    return jnp.sum(bce) / jnp.maximum(jnp.sum(t), 1.0)


if __name__ == "__main__":
    # Deterministic module params (the __init__ args).
    gamma = 2.0
    alpha = 0.25

    # Small shapes consistent with the (B, C, N) forward convention.
    B, C, N = 2, 4, 16
    key = jax.random.PRNGKey(0)
    k1, k2 = jax.random.split(key)
    preds = jax.random.normal(k1, (B, C, N), dtype=jnp.float32)
    targets = jax.random.bernoulli(k2, p=0.3, shape=(B, C, N)).astype(jnp.float32)

    loss = jax.block_until_ready(sigmoid_focal_loss(preds, targets, gamma, alpha))
    ref = jax.block_until_ready(_reference_loss(preds, targets, gamma, alpha))

    # Logit-side clamp + softplus formulation is mathematically equivalent but
    # not bit-identical to clamping p; use a tolerance-based check.
    assert jnp.allclose(loss, ref, rtol=1e-4, atol=1e-5), (loss, ref)
    print("KERNEL_OK")
</pallas_src>

<mosaic_0001>
module attributes {stable_mosaic.version = 11 : i64} {
  func.func @_focal_loss_kernel(%arg0: i32, %arg1: i32, %arg2: memref<8x128xf32, #tpu.memory_space<vmem>>, %arg3: memref<8x128xf32, #tpu.memory_space<vmem>>, %arg4: memref<1x8x128xf32, #tpu.memory_space<vmem>>, %arg5: memref<1x8x128xf32, #tpu.memory_space<vmem>>) attributes {dimension_semantics = [#tpu.dimension_semantics<arbitrary>, #tpu.dimension_semantics<arbitrary>], iteration_bounds = array<i64: 1, 1>, scalar_prefetch = 0 : i64, scratch_operands = 0 : i64, tpu.core_type = #tpu.core_type<tc>, window_params = [{transform_indices = @transform_0, window_bounds = array<i64: 8, 128>}, {transform_indices = @transform_1, window_bounds = array<i64: 8, 128>}, {transform_indices = @transform_2, window_bounds = array<i64: 1, 8, 128>}, {transform_indices = @transform_3, window_bounds = array<i64: 1, 8, 128>}]} {
    %c0_i32 = arith.constant 0 : i32
    %0 = arith.cmpi eq, %arg1, %c0_i32 : i32
    %1 = arith.extui %0 : i1 to i32
    %c0_i32_0 = arith.constant 0 : i32
    %2 = arith.cmpi ne, %1, %c0_i32_0 : i32
    scf.if %2 {
      %cst_17 = arith.constant 0.000000e+00 : f32
      %42 = vector.broadcast %cst_17 : f32 to vector<8x128xf32>
      %c0_18 = arith.constant 0 : index
      %c0_19 = arith.constant 0 : index
      %c0_20 = arith.constant 0 : index
      %43 = vector.load %arg4[%c0_18, %c0_19, %c0_20] : memref<1x8x128xf32, #tpu.memory_space<vmem>>, vector<1x8x128xf32>
      %44 = vector.shape_cast %43 : vector<1x8x128xf32> to vector<8x128xf32>
      %45 = vector.shape_cast %42 : vector<8x128xf32> to vector<1x8x128xf32>
      tpu.vector_store %arg4[%c0_18, %c0_19, %c0_20], %45 {strides = array<i32>} : memref<1x8x128xf32, #tpu.memory_space<vmem>>, vector<1x8x128xf32>,
      %cst_21 = arith.constant 0.000000e+00 : f32
      %46 = vector.broadcast %cst_21 : f32 to vector<8x128xf32>
      %c0_22 = arith.constant 0 : index
      %c0_23 = arith.constant 0 : index
      %c0_24 = arith.constant 0 : index
      %47 = vector.load %arg5[%c0_22, %c0_23, %c0_24] : memref<1x8x128xf32, #tpu.memory_space<vmem>>, vector<1x8x128xf32>
      %48 = vector.shape_cast %47 : vector<1x8x128xf32> to vector<8x128xf32>
      %49 = vector.shape_cast %46 : vector<8x128xf32> to vector<1x8x128xf32>
      tpu.vector_store %arg5[%c0_22, %c0_23, %c0_24], %49 {strides = array<i32>} : memref<1x8x128xf32, #tpu.memory_space<vmem>>, vector<1x8x128xf32>,
    } else {
    }
    %c0 = arith.constant 0 : index
    %c0_1 = arith.constant 0 : index
    %3 = vector.load %arg2[%c0, %c0_1] : memref<8x128xf32, #tpu.memory_space<vmem>>, vector<8x128xf32>
    %c0_2 = arith.constant 0 : index
    %c0_3 = arith.constant 0 : index
    %4 = vector.load %arg3[%c0_2, %c0_3] : memref<8x128xf32, #tpu.memory_space<vmem>>, vector<8x128xf32>
    %cst = arith.constant -6.90675497 : f32
    %cst_4 = arith.constant 6.90675497 : f32
    %5 = vector.broadcast %cst : f32 to vector<8x128xf32>
    %6 = arith.maximumf %5, %3 : vector<8x128xf32>
    %7 = vector.broadcast %cst_4 : f32 to vector<8x128xf32>
    %8 = arith.minimumf %7, %6 : vector<8x128xf32>
    %9 = math.exp %8 : vector<8x128xf32>
    %cst_5 = arith.constant 1.000000e+00 : f32
    %10 = vector.broadcast %cst_5 : f32 to vector<8x128xf32>
    %11 = arith.addf %10, %9 : vector<8x128xf32>
    %12 = math.log %11 : vector<8x128xf32>
    %cst_6 = arith.constant 0.000000e+00 : f32
    %13 = vector.broadcast %cst_6 : f32 to vector<8x128xf32>
    %14 = arith.subf %13, %12 : vector<8x128xf32>
    %15 = arith.addf %8, %14 : vector<8x128xf32>
    %16 = math.exp %14 : vector<8x128xf32>
    %cst_7 = arith.constant 1.000000e+00 : f32
    %17 = vector.broadcast %cst_7 : f32 to vector<8x128xf32>
    %18 = arith.subf %17, %16 : vector<8x128xf32>
    %19 = arith.mulf %16, %16 : vector<8x128xf32>
    %20 = arith.mulf %18, %18 : vector<8x128xf32>
    %21 = arith.mulf %19, %15 : vector<8x128xf32>
    %22 = arith.mulf %20, %14 : vector<8x128xf32>
    %cst_8 = arith.constant 1.000000e+00 : f32
    %23 = vector.broadcast %cst_8 : f32 to vector<8x128xf32>
    %24 = arith.cmpf oeq, %4, %23 : vector<8x128xf32>
    %cst_9 = arith.constant -2.500000e-01 : f32
    %25 = vector.broadcast %cst_9 : f32 to vector<8x128xf32>
    %26 = arith.mulf %25, %21 : vector<8x128xf32>
    %cst_10 = arith.constant 0.000000e+00 : f32
    %27 = vector.broadcast %cst_10 : f32 to vector<8x128xf32>
    %28 = arith.cmpf oeq, %4, %27 : vector<8x128xf32>
    %cst_11 = arith.constant -7.500000e-01 : f32
    %29 = vector.broadcast %cst_11 : f32 to vector<8x128xf32>
    %30 = arith.mulf %29, %22 : vector<8x128xf32>
    %cst_12 = arith.constant 0.000000e+00 : f32
    %31 = vector.broadcast %cst_12 : f32 to vector<8x128xf32>
    %32 = arith.select %28, %30, %31 : vector<8x128xi1>, vector<8x128xf32>
    %33 = arith.select %24, %26, %32 : vector<8x128xi1>, vector<8x128xf32>
    %c0_i32_13 = arith.constant 0 : i32
    %34 = arith.cmpi eq, %arg0, %c0_i32_13 : i32
    %c0_i32_14 = arith.constant 0 : i32
    %35 = arith.cmpi eq, %arg1, %c0_i32_14 : i32
    %36 = arith.andi %34, %35 : i1
    %true = arith.constant true
    %37 = arith.xori %36, %true : i1
    %38 = arith.extui %37 : i1 to i32
    %c0_i32_15 = arith.constant 0 : i32
    %39 = arith.cmpi ne, %38, %c0_i32_15 : i32
    scf.if %39 {
      %c0_17 = arith.constant 0 : index
      %c0_18 = arith.constant 0 : index
      %c0_19 = arith.constant 0 : index
      %42 = vector.load %arg4[%c0_17, %c0_18, %c0_19] : memref<1x8x128xf32, #tpu.memory_space<vmem>>, vector<1x8x128xf32>
      %43 = vector.shape_cast %42 : vector<1x8x128xf32> to vector<8x128xf32>
      %44 = vector.shape_cast %33 : vector<8x128xf32> to vector<1x8x128xf32>
      %cst_20 = arith.constant dense<0.000000e+00> : vector<8x128xf32>
      %45 = vector.multi_reduction <add>, %44, %cst_20 [0] : vector<1x8x128xf32> to vector<8x128xf32>
      %46 = arith.addf %43, %45 : vector<8x128xf32>
      %c0_21 = arith.constant 0 : index
      %c0_22 = arith.constant 0 : index
      %c0_23 = arith.constant 0 : index
      %47 = vector.load %arg4[%c0_21, %c0_22, %c0_23] : memref<1x8x128xf32, #tpu.memory_space<vmem>>, vector<1x8x128xf32>
      %48 = vector.shape_cast %47 : vector<1x8x128xf32> to vector<8x128xf32>
      %49 = vector.shape_cast %46 : vector<8x128xf32> to vector<1x8x128xf32>
      tpu.vector_store %arg4[%c0_21, %c0_22, %c0_23], %49 {strides = array<i32>} : memref<1x8x128xf32, #tpu.memory_space<vmem>>, vector<1x8x128xf32>,
      %c0_24 = arith.constant 0 : index
      %c0_25 = arith.constant 0 : index
      %c0_26 = arith.constant 0 : index
      %50 = vector.load %arg5[%c0_24, %c0_25, %c0_26] : memref<1x8x128xf32, #tpu.memory_space<vmem>>, vector<1x8x128xf32>
      %51 = vector.shape_cast %50 : vector<1x8x128xf32> to vector<8x128xf32>
      %52 = vector.shape_cast %4 : vector<8x128xf32> to vector<1x8x128xf32>
      %cst_27 = arith.constant dense<0.000000e+00> : vector<8x128xf32>
      %53 = vector.multi_reduction <add>, %52, %cst_27 [0] : vector<1x8x128xf32> to vector<8x128xf32>
      %54 = arith.addf %51, %53 : vector<8x128xf32>
      %c0_28 = arith.constant 0 : index
      %c0_29 = arith.constant 0 : index
      %c0_30 = arith.constant 0 : index
      %55 = vector.load %arg5[%c0_28, %c0_29, %c0_30] : memref<1x8x128xf32, #tpu.memory_space<vmem>>, vector<1x8x128xf32>
      %56 = vector.shape_cast %55 : vector<1x8x128xf32> to vector<8x128xf32>
      %57 = vector.shape_cast %54 : vector<8x128xf32> to vector<1x8x128xf32>
      tpu.vector_store %arg5[%c0_28, %c0_29, %c0_30], %57 {strides = array<i32>} : memref<1x8x128xf32, #tpu.memory_space<vmem>>, vector<1x8x128xf32>,
    } else {
    }
    %40 = arith.extui %36 : i1 to i32
    %c0_i32_16 = arith.constant 0 : i32
    %41 = arith.cmpi ne, %40, %c0_i32_16 : i32
    scf.if %41 {
      %42 = tpu.iota {dimensions = array<i32: 0>} : vector<8x128xi32>
      %c1_i32 = arith.constant 1 : i32
      %43 = vector.broadcast %c1_i32 : i32 to vector<8x128xi32>
      %44 = arith.cmpi slt, %42, %43 : vector<8x128xi32>
      %cst_17 = arith.constant 0.000000e+00 : f32
      %45 = vector.broadcast %cst_17 : f32 to vector<8x128xf32>
      %46 = arith.select %44, %33, %45 : vector<8x128xi1>, vector<8x128xf32>
      %cst_18 = arith.constant 0.000000e+00 : f32
      %47 = vector.broadcast %cst_18 : f32 to vector<8x128xf32>
      %48 = arith.select %44, %4, %47 : vector<8x128xi1>, vector<8x128xf32>
      %c0_19 = arith.constant 0 : index
      %c0_20 = arith.constant 0 : index
      %c0_21 = arith.constant 0 : index
      %49 = vector.load %arg4[%c0_19, %c0_20, %c0_21] : memref<1x8x128xf32, #tpu.memory_space<vmem>>, vector<1x8x128xf32>
      %50 = vector.shape_cast %49 : vector<1x8x128xf32> to vector<8x128xf32>
      %51 = vector.shape_cast %46 : vector<8x128xf32> to vector<1x8x128xf32>
      %cst_22 = arith.constant dense<0.000000e+00> : vector<8x128xf32>
      %52 = vector.multi_reduction <add>, %51, %cst_22 [0] : vector<1x8x128xf32> to vector<8x128xf32>
      %53 = arith.addf %50, %52 : vector<8x128xf32>
      %c0_23 = arith.constant 0 : index
      %c0_24 = arith.constant 0 : index
      %c0_25 = arith.constant 0 : index
      %54 = vector.load %arg4[%c0_23, %c0_24, %c0_25] : memref<1x8x128xf32, #tpu.memory_space<vmem>>, vector<1x8x128xf32>
      %55 = vector.shape_cast %54 : vector<1x8x128xf32> to vector<8x128xf32>
      %56 = vector.shape_cast %53 : vector<8x128xf32> to vector<1x8x128xf32>
      tpu.vector_store %arg4[%c0_23, %c0_24, %c0_25], %56 {strides = array<i32>} : memref<1x8x128xf32, #tpu.memory_space<vmem>>, vector<1x8x128xf32>,
      %c0_26 = arith.constant 0 : index
      %c0_27 = arith.constant 0 : index
      %c0_28 = arith.constant 0 : index
      %57 = vector.load %arg5[%c0_26, %c0_27, %c0_28] : memref<1x8x128xf32, #tpu.memory_space<vmem>>, vector<1x8x128xf32>
      %58 = vector.shape_cast %57 : vector<1x8x128xf32> to vector<8x128xf32>
      %59 = vector.shape_cast %48 : vector<8x128xf32> to vector<1x8x128xf32>
      %cst_29 = arith.constant dense<0.000000e+00> : vector<8x128xf32>
      %60 = vector.multi_reduction <add>, %59, %cst_29 [0] : vector<1x8x128xf32> to vector<8x128xf32>
      %61 = arith.addf %58, %60 : vector<8x128xf32>
      %c0_30 = arith.constant 0 : index
      %c0_31 = arith.constant 0 : index
      %c0_32 = arith.constant 0 : index
      %62 = vector.load %arg5[%c0_30, %c0_31, %c0_32] : memref<1x8x128xf32, #tpu.memory_space<vmem>>, vector<1x8x128xf32>
      %63 = vector.shape_cast %62 : vector<1x8x128xf32> to vector<8x128xf32>
      %64 = vector.shape_cast %61 : vector<8x128xf32> to vector<1x8x128xf32>
      tpu.vector_store %arg5[%c0_30, %c0_31, %c0_32], %64 {strides = array<i32>} : memref<1x8x128xf32, #tpu.memory_space<vmem>>, vector<1x8x128xf32>,
    } else {
    }
    return
  }
  func.func @transform_0(%arg0: i32, %arg1: i32) -> (i32, i32) {
    %c1_i32 = arith.constant 1 : i32
    %0 = arith.muli %arg0, %c1_i32 : i32
    %1 = arith.addi %0, %arg1 : i32
    %c0_i32 = arith.constant 0 : i32
    %c0_i32_0 = arith.constant 0 : i32
    return %1, %c0_i32 : i32, i32
  }
  func.func @transform_1(%arg0: i32, %arg1: i32) -> (i32, i32) {
    %c1_i32 = arith.constant 1 : i32
    %0 = arith.muli %arg0, %c1_i32 : i32
    %1 = arith.addi %0, %arg1 : i32
    %c0_i32 = arith.constant 0 : i32
    %c0_i32_0 = arith.constant 0 : i32
    return %1, %c0_i32 : i32, i32
  }
  func.func @transform_2(%arg0: i32, %arg1: i32) -> (i32, i32, i32) {
    %c0_i32 = arith.constant 0 : i32
    %c0_i32_0 = arith.constant 0 : i32
    %c0_i32_1 = arith.constant 0 : i32
    return %arg0, %c0_i32, %c0_i32_0 : i32, i32, i32
  }
  func.func @transform_3(%arg0: i32, %arg1: i32) -> (i32, i32, i32) {
    %c0_i32 = arith.constant 0 : i32
    %c0_i32_0 = arith.constant 0 : i32
    %c0_i32_1 = arith.constant 0 : i32
    return %arg0, %c0_i32, %c0_i32_0 : i32, i32, i32
  }
}

</mosaic_0001>

<bundles_post_ra>
// kernel: tpu_custom_call.1
= control target key start
LH: loop header
LB: loop body
LE: loop exit
PB: predicated region body
PF: predicated region fallthrough
CT: control target
= control target key end

     0   :  { %9 = vsyncpa [#allocation3], 0  ;;  %s311_s0 = inlined_call_operand.hbm [shape: f32[1,128], index: 0, kind: input, shape index: {}]   ;;  %s312_s1 = inlined_call_operand.vmem [shape: f32[1,128], index: 1, kind: input, shape index: {}]   ;;  %s313_s2 = inlined_call_operand.hbm [shape: f32[1,8,128], index: 2, kind: output, shape index: {0}]   ;;  %s314_s3 = inlined_call_operand.hbm [shape: f32[1,8,128], index: 3, kind: output, shape index: {1}]  }
   0x1   :  { %10 = vsyncpa [#allocation4], 0 }
   0x2   :  { %11 = vsyncpa [#allocation7], 0 }
   0x3   :  { %20 = vsyncadd [#allocation3], 112  ;;  %s245_s12 = smov [#allocation2]   ;;  %s173_s16 = scalar_lea.hbm %s311_s0, 16 }
   0x4   :  { %s24_s13 = sshll.u32 %s245_s12, 4  ;;  %p174_p0 = scmp.ne.s32.totalorder %s311_s0, %s173_s16  ;;  %s25_s13 = int_to_ptr.vmem [resolvable:$true] %s24_s13 }
   0x5   :  { %p177_p1 = scmp.lt.u32.totalorder %s173_s16, %s311_s0 }
   0x7   :  { %p179_p2 = pnand %p177_p1, %p174_p0 }
   0x9   :  { %182 = shalt.err (!%p179_p2)
}
   0xa   :  { %s183_s21 = scalar_lea.vmem %s25_s13, 16  ;;  %s187_s22 = scalar_lea.vmem %s25_s13, 128 }
   0xb   :  { %p184_p3 = scmp.ne.s32.totalorder %s25_s13, %s183_s21  ;;  %p188_p4 = scmp.lt.s32.totalorder %s25_s13, %s25_s13 }
   0xc   :  { %p189_p5 = scmp.lt.s32.totalorder %s187_s22, %s183_s21 }
   0xe   :  { %p190_p6 = por %p189_p5, %p188_p4 }
  0x10   :  { %p191_p7 = pnand %p190_p6, %p184_p3 }
  0x12   :  { %194 = shalt.err (!%p191_p7)
}
  0x13   :  { %s246_s23 = smov 16   ;;  %s247_s24 = smov 1  }
  0x14   :  { %30 = dma.hbm_to_vmem [thread:$0]  %s311_s0, 16, %s25_s13, [#allocation3], %s246_s23, %s246_s23, %s247_s24  }
  0x15   :  { %239 = dma.done.wait [#allocation3], 128  }
  0x16   :  { %240 = vsyncadd [#allocation3], 4294967168  ;;  %v104_v0 = vlaneseq  ;;  %s248_s27 = smov [#allocation6]   ;;  %v75_v2 = vld [vmem:[#allocation2] sm:$0xff] }
  0x17   :  { %s144_s28 = sshll.u32 %s248_s27, 4  ;;  %v76_v3 = vld [vmem:[%s312_s1] sm:$0xff]  ;;  %v160_v4 = vclamps-f32 %v75_v2, 6.906755  ;;  %s145_s28 = int_to_ptr.vmem [resolvable:$true] %s144_s28 }
  0x18   :  { %v105_v1 = vshrl.u32 %v104_v0, 7  ;;  %s195_s0 = scalar_lea.vmem %s145_s28, 128  ;;  %p200_p9 = scmp.lt.s32.totalorder %s145_s28, %s145_s28 }
  0x19   :  { %v79_v6 = vmul.f32 1.442695, %v160_v4  ;;  %p196_p8 = scmp.ne.s32.totalorder %s145_s28, %s195_s0  ;;  %p201_p10 = scmp.lt.s32.totalorder %s195_s0, %s195_s0 }
  0x1a   :  { %vm106_vm0 = vcmp.lt.s32.totalorder %v105_v1, 1 }
  0x1b   :  { %v108_v5 = vsel %vm106_vm0, %v76_v3, 0.0  ;;  %167 = vpow2.f32 %v79_v6  ;;  %p202_p11 = por %p201_p10, %p200_p9 }
  0x1c   :  { %116 = vst [vmem:[#allocation6] sm:$0xff] %v108_v5 }
  0x1d   :  { %p203_p12 = pnand %p202_p11, %p196_p8 }
  0x1f   :  { %206 = shalt.err (!%p203_p12)
}
  0x20   :  { %s207_s6 = scalar_lea.hbm %s314_s3, 128 }
  0x21   :  { %p208_p13 = scmp.ne.s32.totalorder %s314_s3, %s207_s6  ;;  %p211_p0 = scmp.lt.u32.totalorder %s207_s6, %s314_s3 }
  0x23   :  { %p213_p1 = pnand %p211_p0, %p208_p13 }
  0x25   :  { %216 = shalt.err (!%p213_p1)
}
  0x26   :  { %147 = dma.vmem_to_hbm [thread:$0]  %s145_s28, 128, %s314_s3, [#allocation7]   ;;  %v168_v7 = vpop.eup %167  ;;  %vm95_vm1 = vcmp.eq.f32.partialorder %v76_v3, 0.0  ;;  %vm93_vm2 = vcmp.eq.f32.partialorder %v76_v3, 1.0 }
  0x27   :  { %v81_v8 = vadd.f32 1.0, %v168_v7  ;;  %s249_s3 = smov [#allocation5]  }
  0x28   :  { %s134_s12 = sshll.u32 %s249_s3, 4  ;;  %s135_s12 = int_to_ptr.vmem [resolvable:$true] %s134_s12 }
  0x29   :  { %169 = vlog2.f32 %v81_v8  ;;  %s217_s13 = scalar_lea.vmem %s135_s12, 128  ;;  %p222_p3 = scmp.lt.s32.totalorder %s135_s12, %s135_s12 }
  0x2a   :  { %p218_p2 = scmp.ne.s32.totalorder %s135_s12, %s217_s13  ;;  %p223_p4 = scmp.lt.s32.totalorder %s217_s13, %s217_s13 }
  0x2c   :  { %p224_p5 = por %p223_p4, %p222_p3 }
  0x2e   :  { %p225_p6 = pnand %p224_p5, %p218_p2 }
  0x33   :  { %v170_v9 = vpop.eup %169 }
  0x34   :  { %v83_v10 = vmul.f32 0.6931472, %v170_v9 }
  0x36   :  { %v84_v11 = vsub.f32 0.0, %v83_v10 }
  0x38   :  { %v86_v12 = vmul.f32 1.442695, %v84_v11  ;;  %v85_v13 = vadd.f32 %v160_v4, %v84_v11 }
  0x3a   :  { %171 = vpow2.f32 %v86_v12 }
  0x44   :  { %v172_v14 = vpop.eup %171 }
  0x45   :  { %v88_v15 = vsub.f32 1.0, %v172_v14  ;;  %v89_v16 = vmul.f32 %v172_v14, %v172_v14 }
  0x47   :  { %v90_v17 = vmul.f32 %v88_v15, %v88_v15  ;;  %v91_v18 = vmul.f32 %v89_v16, %v85_v13 }
  0x49   :  { %v92_v19 = vmul.f32 %v90_v17, %v84_v11  ;;  %v94_v20 = vmul.f32 -0.25, %v91_v18 }
  0x4b   :  { %v96_v21 = vmul.f32 -0.75, %v92_v19 }
  0x4d   :  { %v97_v22 = vsel %vm95_vm1, %v96_v21, 0.0 }
  0x4e   :  { %v98_v23 = vsel %vm93_vm2, %v94_v20, %v97_v22 }
  0x4f   :  { %v107_v24 = vsel %vm106_vm0, %v98_v23, 0.0 }
  0x50   :  { %112 = vst [vmem:[#allocation5] sm:$0xff] %v107_v24 }
  0x51   :  { %228 = shalt.err (!%p225_p6)
}
  0x52   :  { %s229_s16 = scalar_lea.hbm %s313_s2, 128 }
  0x53   :  { %p230_p7 = scmp.ne.s32.totalorder %s313_s2, %s229_s16  ;;  %p233_p8 = scmp.lt.u32.totalorder %s229_s16, %s313_s2 }
  0x55   :  { %p235_p9 = pnand %p233_p8, %p230_p7 }
  0x57   :  { %238 = shalt.err (!%p235_p9)
}
  0x58   :  { %137 = dma.vmem_to_hbm [thread:$0]  %s135_s12, 128, %s313_s2, [#allocation4]  }
  0x59   :  { %241 = dma.done.wait [#allocation4], 128  }
  0x5a   :  { %242 = vsyncadd [#allocation4], 4294967168 }
  0x5b   :  { %243 = dma.done.wait [#allocation7], 128  }
  0x5c   :  { %244 = vsyncadd [#allocation7], 4294967168 }
  0x5d   :  { %154 = vsyncpa [#allocation3], 1 }
  0x5e   :  { %155 = vsyncpa [#allocation4], 1 }
  0x5f   :  { %156 = vsyncpa [#allocation7], 1 }

</bundles_post_ra>
